<compile_context>
chip_gen: v7x
topology: tpu7x:2x2x1
jax: 0.10.0
libtpu: 0.0.40
codegen_flags: <defaults>
</compile_context>

<pallas_src>
import math

import numpy as np
import jax
import jax.numpy as jnp
from jax.experimental import pallas as pl
from jax.experimental.pallas import tpu as pltpu


def _vmem_budget():
    """(per-block byte budget, vmem_limit_bytes) by TPU generation."""
    cap = 128 * 1024 * 1024
    try:
        cap = int(pltpu.get_tpu_info().vmem_capacity_bytes)
    except Exception:
        pass
    if cap >= 100 * 1024 * 1024:          # v5e / v6e: 128 MiB physical VMEM
        return 8 * 1024 * 1024, 64 * 1024 * 1024
    return 4 * 1024 * 1024, 32 * 1024 * 1024   # v7x: 64 MiB physical VMEM


def _channel_tile(B, C, HW, itemsize, block_budget):
    """Multiple-of-8 channel tile; last grid block may be partial."""
    if C <= 8:
        # TODO(synk): for B == 1 with very few channels (e.g. the 1-D path) a
        # second parallel axis over H-row blocks with a +-1-row halo would keep
        # v7x's second TensorCore busy; skipped here since those cases are tiny.
        return C
    ct = (block_budget // (HW * itemsize)) // 8 * 8
    ct = max(8, min(ct, (C // 8) * 8))
    if B == 1:
        # Keep >= 2 channel tiles so v7x's second TensorCore has work.
        ct = min(ct, max(8, ((C // 2) // 8) * 8))
    return ct


def _make_aniso_kernel(H, W):
    HW = H * W

    def _roll(v, s):
        s = s % HW
        return v if s == 0 else pltpu.roll(v, shift=s, axis=1)

    def kernel(mw_ref, x_ref, o_ref):
        # mw_ref : (9, HW) f32 VMEM — per-batch filter taps pre-multiplied with
        #          the zero-padding masks, evaluated at the pre-vertical-roll
        #          position (vertical mask folded in, see wrapper).
        # x_ref  : (Ct, HW) VMEM    — input tile, flattened spatial on lanes.
        # o_ref  : (Ct, HW) VMEM
        x = x_ref[...].astype(jnp.float32)

        # Horizontal taps x[q-1], x[q], x[q+1]; circular wrap is killed by the
        # folded column masks.
        x_shift = (
            _roll(x, 1),        # dj = 0 : left neighbour
            x,                  # dj = 1 : centre
            _roll(x, HW - 1),   # dj = 2 : right neighbour
        )

        # Row-factored stencil: one horizontal combination per row offset,
        # then bring each to the output row with a single whole-row roll.
        g = []
        for di in range(3):
            acc = None
            for dj in range(3):
                t = di * 3 + dj
                term = x_shift[dj] * mw_ref[t:t + 1, :]   # (Ct,HW) * (1,HW)
                acc = term if acc is None else acc + term
            g.append(acc)

        out = g[1]
        out = out + _roll(g[0], W)        # contribution from the row above
        out = out + _roll(g[2], HW - W)   # contribution from the row below
        o_ref[...] = out.astype(o_ref.dtype)

    return kernel


def _masked_weights(kernel, H, W):
    """(B, 9, H*W) f32: filter taps pre-multiplied by the padding masks.

    Masks are evaluated at the pre-vertical-roll position q (column mask is
    roll-invariant; the vertical validity of tap row di at output p becomes a
    condition on row(q) = row(p) + di - 1 mod H), which lets the kernel use
    only 4 rolls total.
    """
    B = kernel.shape[0]
    HW = H * W
    pos = jnp.arange(HW, dtype=jnp.int32)
    row, col = pos // W, pos % W
    ones = jnp.ones((HW,), dtype=jnp.float32)
    vm = jnp.stack([(row < H - 1).astype(jnp.float32),   # di = 0
                    ones,                                 # di = 1
                    (row > 0).astype(jnp.float32)])       # di = 2
    hm = jnp.stack([(col > 0).astype(jnp.float32),        # dj = 0
                    ones,                                 # dj = 1
                    (col < W - 1).astype(jnp.float32)])   # dj = 2
    tap_mask = (vm[:, None, :] * hm[None, :, :]).reshape(9, HW)     # (9, HW)
    return kernel.reshape(B, 9, 1).astype(jnp.float32) * tap_mask[None]


@jax.jit
def anisotropy_forward(x, kernel):
    """Pallas TPU implementation of Anisotropy.forward."""
    if x.ndim == 1:
        L = x.shape[0]
        n = int(round(math.sqrt(L)))
        assert n * n == L, "1-D input length must be a perfect square"
        return anisotropy_forward(x.reshape(1, 1, n, n), kernel).reshape(-1)

    assert x.ndim == 4
    B, C, H, W = x.shape
    assert kernel.shape == (B, 1, 3, 3)
    HW = H * W

    x_flat = x.reshape(B, C, HW)              # free (metadata) reshape
    mw = _masked_weights(kernel, H, W)        # (B, 9, HW) f32

    block_budget, vmem_limit = _vmem_budget()
    Ct = _channel_tile(B, C, HW, x.dtype.itemsize, block_budget)
    grid = (B, pl.cdiv(C, Ct))

    out_flat = pl.pallas_call(
        _make_aniso_kernel(H, W),
        out_shape=jax.ShapeDtypeStruct((B, C, HW), x.dtype),
        grid=grid,
        in_specs=[
            pl.BlockSpec((None, 9, HW), lambda b, c: (b, 0, 0)),    # masked taps
            pl.BlockSpec((None, Ct, HW), lambda b, c: (b, c, 0)),   # x tile
        ],
        out_specs=pl.BlockSpec((None, Ct, HW), lambda b, c: (b, c, 0)),
        compiler_params=pltpu.CompilerParams(
            dimension_semantics=("parallel", "parallel"),
            vmem_limit_bytes=vmem_limit),
    )(mw, x_flat)

    return out_flat.reshape(B, C, H, W)


def _reference_forward(x, kernel):
    """Pure-JAX reference mirroring the PyTorch grouped conv."""
    if x.ndim == 1:
        n = int(round(math.sqrt(x.shape[0])))
        return _reference_forward(x.reshape(1, 1, n, n), kernel).reshape(-1)
    B = x.shape[0]
    xt = jnp.transpose(x, (1, 0, 2, 3))  # (C, B, H, W)
    y = jax.lax.conv_general_dilated(
        xt, kernel.astype(x.dtype),
        window_strides=(1, 1), padding=((1, 1), (1, 1)),
        dimension_numbers=("NCHW", "OIHW", "NCHW"),
        feature_group_count=B)
    return jnp.transpose(y, (1, 0, 2, 3))


if __name__ == "__main__":
    key = jax.random.PRNGKey(0)
    kx, kk, k1 = jax.random.split(key, 3)

    # 4-D path: batch=2, channels=4, spatial=16x16; kernel (B, 1, 3, 3).
    B, C, H, W = 2, 4, 16, 16
    x = jax.random.normal(kx, (B, C, H, W), dtype=jnp.float32)
    kernel = jax.random.normal(kk, (B, 1, 3, 3), dtype=jnp.float32)

    out = jax.block_until_ready(anisotropy_forward(x, kernel))
    ref = _reference_forward(x, kernel)
    assert out.shape == (B, C, H, W)
    assert np.allclose(np.asarray(out), np.asarray(ref), atol=1e-5, rtol=1e-5)

    # 1-D path: flat vector of length n*n with kernel (1, 1, 3, 3).
    n = 16
    x1d = jax.random.normal(k1, (n * n,), dtype=jnp.float32)
    out1d = jax.block_until_ready(anisotropy_forward(x1d, kernel[:1]))
    ref1d = _reference_forward(x1d, kernel[:1])
    assert out1d.shape == (n * n,)
    assert np.allclose(np.asarray(out1d), np.asarray(ref1d), atol=1e-5, rtol=1e-5)

    print("KERNEL_OK")
</pallas_src>

<mosaic_0001>
module attributes {stable_mosaic.version = 11 : i64} {
  func.func @kernel(%arg0: i32, %arg1: i32, %arg2: memref<1x9x256xf32, #tpu.memory_space<vmem>>, %arg3: memref<1x4x256xf32, #tpu.memory_space<vmem>>, %arg4: memref<1x4x256xf32, #tpu.memory_space<vmem>>) attributes {dimension_semantics = [#tpu.dimension_semantics<parallel>, #tpu.dimension_semantics<parallel>], iteration_bounds = array<i64: 2, 1>, scalar_prefetch = 0 : i64, scratch_operands = 0 : i64, tpu.core_type = #tpu.core_type<tc>, window_params = [{transform_indices = @transform_0, window_bounds = array<i64: 1, 9, 256>}, {transform_indices = @transform_1, window_bounds = array<i64: 1, 4, 256>}, {transform_indices = @transform_2, window_bounds = array<i64: 1, 4, 256>}]} {
    %c0 = arith.constant 0 : index
    %c0_0 = arith.constant 0 : index
    %c0_1 = arith.constant 0 : index
    %0 = vector.load %arg3[%c0, %c0_0, %c0_1] : memref<1x4x256xf32, #tpu.memory_space<vmem>>, vector<1x4x256xf32>
    %1 = vector.shape_cast %0 : vector<1x4x256xf32> to vector<4x256xf32>
    %c1_i32 = arith.constant 1 : i32
    %2 = tpu.dynamic_rotate %1 by %c1_i32 dim 1 : vector<4x256xf32>, i32 -> vector<4x256xf32>
    %c255_i32 = arith.constant 255 : i32
    %3 = tpu.dynamic_rotate %1 by %c255_i32 dim 1 : vector<4x256xf32>, i32 -> vector<4x256xf32>
    %c0_2 = arith.constant 0 : index
    %c0_3 = arith.constant 0 : index
    %c0_4 = arith.constant 0 : index
    %4 = vector.load %arg2[%c0_2, %c0_3, %c0_4] : memref<1x9x256xf32, #tpu.memory_space<vmem>>, vector<1x1x256xf32>
    %5 = vector.shape_cast %4 : vector<1x1x256xf32> to vector<1x256xf32>
    %6 = vector.broadcast %5 : vector<1x256xf32> to vector<4x256xf32>
    %7 = arith.mulf %2, %6 : vector<4x256xf32>
    %c0_5 = arith.constant 0 : index
    %c1 = arith.constant 1 : index
    %c0_6 = arith.constant 0 : index
    %8 = vector.load %arg2[%c0_5, %c1, %c0_6] : memref<1x9x256xf32, #tpu.memory_space<vmem>>, vector<1x1x256xf32>
    %9 = vector.shape_cast %8 : vector<1x1x256xf32> to vector<1x256xf32>
    %10 = vector.broadcast %9 : vector<1x256xf32> to vector<4x256xf32>
    %11 = arith.mulf %1, %10 : vector<4x256xf32>
    %12 = arith.addf %7, %11 : vector<4x256xf32>
    %c0_7 = arith.constant 0 : index
    %c2 = arith.constant 2 : index
    %c0_8 = arith.constant 0 : index
    %13 = vector.load %arg2[%c0_7, %c2, %c0_8] : memref<1x9x256xf32, #tpu.memory_space<vmem>>, vector<1x1x256xf32>
    %14 = vector.shape_cast %13 : vector<1x1x256xf32> to vector<1x256xf32>
    %15 = vector.broadcast %14 : vector<1x256xf32> to vector<4x256xf32>
    %16 = arith.mulf %3, %15 : vector<4x256xf32>
    %17 = arith.addf %12, %16 : vector<4x256xf32>
    %c0_9 = arith.constant 0 : index
    %c3 = arith.constant 3 : index
    %c0_10 = arith.constant 0 : index
    %18 = vector.load %arg2[%c0_9, %c3, %c0_10] : memref<1x9x256xf32, #tpu.memory_space<vmem>>, vector<1x1x256xf32>
    %19 = vector.shape_cast %18 : vector<1x1x256xf32> to vector<1x256xf32>
    %20 = vector.broadcast %19 : vector<1x256xf32> to vector<4x256xf32>
    %21 = arith.mulf %2, %20 : vector<4x256xf32>
    %c0_11 = arith.constant 0 : index
    %c4 = arith.constant 4 : index
    %c0_12 = arith.constant 0 : index
    %22 = vector.load %arg2[%c0_11, %c4, %c0_12] : memref<1x9x256xf32, #tpu.memory_space<vmem>>, vector<1x1x256xf32>
    %23 = vector.shape_cast %22 : vector<1x1x256xf32> to vector<1x256xf32>
    %24 = vector.broadcast %23 : vector<1x256xf32> to vector<4x256xf32>
    %25 = arith.mulf %1, %24 : vector<4x256xf32>
    %26 = arith.addf %21, %25 : vector<4x256xf32>
    %c0_13 = arith.constant 0 : index
    %c5 = arith.constant 5 : index
    %c0_14 = arith.constant 0 : index
    %27 = vector.load %arg2[%c0_13, %c5, %c0_14] : memref<1x9x256xf32, #tpu.memory_space<vmem>>, vector<1x1x256xf32>
    %28 = vector.shape_cast %27 : vector<1x1x256xf32> to vector<1x256xf32>
    %29 = vector.broadcast %28 : vector<1x256xf32> to vector<4x256xf32>
    %30 = arith.mulf %3, %29 : vector<4x256xf32>
    %31 = arith.addf %26, %30 : vector<4x256xf32>
    %c0_15 = arith.constant 0 : index
    %c6 = arith.constant 6 : index
    %c0_16 = arith.constant 0 : index
    %32 = vector.load %arg2[%c0_15, %c6, %c0_16] : memref<1x9x256xf32, #tpu.memory_space<vmem>>, vector<1x1x256xf32>
    %33 = vector.shape_cast %32 : vector<1x1x256xf32> to vector<1x256xf32>
    %34 = vector.broadcast %33 : vector<1x256xf32> to vector<4x256xf32>
    %35 = arith.mulf %2, %34 : vector<4x256xf32>
    %c0_17 = arith.constant 0 : index
    %c7 = arith.constant 7 : index
    %c0_18 = arith.constant 0 : index
    %36 = vector.load %arg2[%c0_17, %c7, %c0_18] : memref<1x9x256xf32, #tpu.memory_space<vmem>>, vector<1x1x256xf32>
    %37 = vector.shape_cast %36 : vector<1x1x256xf32> to vector<1x256xf32>
    %38 = vector.broadcast %37 : vector<1x256xf32> to vector<4x256xf32>
    %39 = arith.mulf %1, %38 : vector<4x256xf32>
    %40 = arith.addf %35, %39 : vector<4x256xf32>
    %c0_19 = arith.constant 0 : index
    %c8 = arith.constant 8 : index
    %c0_20 = arith.constant 0 : index
    %41 = vector.load %arg2[%c0_19, %c8, %c0_20] : memref<1x9x256xf32, #tpu.memory_space<vmem>>, vector<1x1x256xf32>
    %42 = vector.shape_cast %41 : vector<1x1x256xf32> to vector<1x256xf32>
    %43 = vector.broadcast %42 : vector<1x256xf32> to vector<4x256xf32>
    %44 = arith.mulf %3, %43 : vector<4x256xf32>
    %45 = arith.addf %40, %44 : vector<4x256xf32>
    %c16_i32 = arith.constant 16 : i32
    %46 = tpu.dynamic_rotate %17 by %c16_i32 dim 1 : vector<4x256xf32>, i32 -> vector<4x256xf32>
    %47 = arith.addf %31, %46 : vector<4x256xf32>
    %c240_i32 = arith.constant 240 : i32
    %48 = tpu.dynamic_rotate %45 by %c240_i32 dim 1 : vector<4x256xf32>, i32 -> vector<4x256xf32>
    %49 = arith.addf %47, %48 : vector<4x256xf32>
    %c0_21 = arith.constant 0 : index
    %c0_22 = arith.constant 0 : index
    %c0_23 = arith.constant 0 : index
    %50 = vector.load %arg4[%c0_21, %c0_22, %c0_23] : memref<1x4x256xf32, #tpu.memory_space<vmem>>, vector<1x4x256xf32>
    %51 = vector.shape_cast %50 : vector<1x4x256xf32> to vector<4x256xf32>
    %52 = vector.shape_cast %49 : vector<4x256xf32> to vector<1x4x256xf32>
    tpu.vector_store %arg4[%c0_21, %c0_22, %c0_23], %52 {strides = array<i32>} : memref<1x4x256xf32, #tpu.memory_space<vmem>>, vector<1x4x256xf32>,
    return
  }
  func.func @transform_0(%arg0: i32, %arg1: i32) -> (i32, i32, i32) {
    %c0_i32 = arith.constant 0 : i32
    %c0_i32_0 = arith.constant 0 : i32
    %c0_i32_1 = arith.constant 0 : i32
    return %arg0, %c0_i32, %c0_i32_0 : i32, i32, i32
  }
  func.func @transform_1(%arg0: i32, %arg1: i32) -> (i32, i32, i32) {
    %c0_i32 = arith.constant 0 : i32
    %c0_i32_0 = arith.constant 0 : i32
    return %arg0, %arg1, %c0_i32 : i32, i32, i32
  }
  func.func @transform_2(%arg0: i32, %arg1: i32) -> (i32, i32, i32) {
    %c0_i32 = arith.constant 0 : i32
    %c0_i32_0 = arith.constant 0 : i32
    return %arg0, %arg1, %c0_i32 : i32, i32, i32
  }
}

</mosaic_0001>

<bundles_post_ra>
// kernel: mul.22
= control target key start
LH: loop header
LB: loop body
LE: loop exit
PB: predicated region body
PF: predicated region fallthrough
CT: control target
= control target key end

     0   :  { %s10_s10 = smov 3  ;;  %vm12_vm0 = vcmask 23552   ;;  %s22_s11 = smov 3  ;;  %vm19_vm1 = vcmask 72752   ;;  %vm26_vm2 = vcmask 48152   ;;  %s58_s0 = inlined_call_operand.vmem [shape: f32[2,3,3], index: 0, kind: input, shape index: {}]   ;;  %s59_s1 = inlined_call_operand.vmem [shape: f32[2,9], index: 1, kind: output, shape index: {}]  }
   0x1   :  { %v34_v0 = vld [vmem:[%s58_s0 + $0x4] sm:$0xf]  ;;  %v8_v1 = vld [vmem:[%s58_s0] sm:$0xf]  ;;  %s15_s0 = smov 3  ;;  %s37_s12 = smov 6  }
   0x2   :  { %7 = vst [vmem:[#allocation1 + $0x8] sm:$0xf] %v34_v0  ;;  %9 = vst [vmem:[#allocation1] sm:$0xf] %v8_v1  ;;  %s38_s13 = smov 3  }
   0x9   :  { %v16_v2 = vld [vmem:[#allocation1 + $0x2] ss:$8 sm:%s15_s0]   ;;  %v11_v3 = vld [vmem:[#allocation1] ss:$8 sm:%s10_s10]   ;;  %v23_v4 = vld [vmem:[#allocation1 + $0x1] ss:$8 sm:%s22_s11]  }
   0xa   :  { %17 = vrot.lane.b32.xlu0 %v16_v2, %s37_s12  ;;  %13 = vst.msk [vmem:[#allocation0] sm:$0x3] %vm12_vm0, %v11_v3  }
   0xe   :  { %24 = vrot.lane.b32.xlu0 %v23_v4, %s38_s13 }
  0x7c   :  { %v18_v5 = vpop.permute.xlu0 %17  }
  0x7d   :  { %20 = vst.msk [vmem:[#allocation0] sm:$0x3] %vm19_vm1, %v18_v5  }
  0x80   :  { %v25_v6 = vpop.permute.xlu0 %24  }
  0x81   :  { %27 = vst.msk [vmem:[#allocation0] sm:$0x3] %vm26_vm2, %v25_v6  }
  0x88   :  { %v31_v7 = vld [vmem:[#allocation0] sm:$0x3] }
  0x89   :  { %33 = vst [vmem:[%s59_s1] sm:$0x3] %v31_v7 }

// kernel: anisotropy_forward.1
= control target key start
LH: loop header
LB: loop body
LE: loop exit
PB: predicated region body
PF: predicated region fallthrough
CT: control target
= control target key end

     0   :  { %7 = vsyncpa [#allocation3], 0  ;;  %s1079_s0 = inlined_call_operand.hbm [shape: f32[2,9,256], index: 0, kind: input, shape index: {}]   ;;  %s1080_s1 = inlined_call_operand.hbm [shape: f32[2,4,256], index: 1, kind: input, shape index: {}]   ;;  %s1081_s2 = inlined_call_operand.hbm [shape: f32[2,4,256], index: 2, kind: output, shape index: {}]  }
   0x1   :  { %9 = vsyncpa [#allocation3 + $0x1], 0 }
   0x2   :  { %10 = vsyncpa [#allocation6], 0 }
   0x3   :  { %12 = vsyncpa [#allocation6 + $0x1], 0 }
   0x4   :  { %13 = vsyncpa [#allocation4], 0 }
   0x5   :  { %15 = vsyncpa [#allocation4 + $0x1], 0  ;;  %s813_s9 = smov 0   ;;  %s815_s10 = smov 0  }
   0x6   :  { %s817_s11 = smov 0   ;;  %s819_s12 = smov 0  }
   0x7   :  { %s821_s13 = smov 0   ;;  %s823_s14 = smov 0  }
   0x8 LB: > { %s537_s15 = sadd.s32 4294967295, %s787_s14   ;;  %s538_s16 = sadd.s32 4294967294, %s787_s14   ;;  %s787_s14 = sphi %s823_s14, %s21_s14   ;;  %s783_s13 = sphi %s821_s13, %s1100_s13   ;;  %s779_s12 = sphi %s819_s12, %s1099_s12   ;;  %s775_s11 = sphi %s817_s11, %s1098_s11   ;;  %s771_s10 = sphi %s815_s10, %s1097_s10   ;;  %s767_s9 = sphi %s813_s9, %s1096_s9  }
   0x9   : > { %s33_s17 = sadd.s32 1, %s783_s13  ;;  %s40_s18 = sadd.s32 1, %s775_s11 }
   0xa   : > { %p35_p0 = scmp.ge.s32.totalorder %s33_s17, 2  ;;  %p47_p1 = scmp.ne.s32.totalorder %s775_s11, %s771_s10 }
   0xb   : > { %p48_p2 = scmp.eq.s32.totalorder %s787_s14, 0  ;;  %p53_p3 = scmp.ne.s32.totalorder %s771_s10, %s767_s9 }
   0xc   : > { %s1102_s17 = smov (%p35_p0, %s33_s17), 0  ;;  %p54_p5 = scmp.eq.s32.totalorder %s537_s15, 0 }
   0xd   : > { %p854_p4 = por %p48_p2, %p47_p1  ;;  %s37_s20 = ssub.s32 %s783_s13, %s1102_s17 }
   0xe   : > { %p107_p6 = scmp.eq.s32.totalorder %s537_s15, 1  ;;  %p38_p7 = scmp.eq.s32.totalorder %s37_s20, 0 }
   0xf   : > { %p860_p8 = por %p54_p5, %p53_p3  ;;  %p113_p10 = scmp.eq.s32.totalorder %s538_s16, 1 }
  0x10   : > { %p864_p9 = por %p107_p6, %p47_p1  ;;  %p584_p13 = scmp.lt.s32.totalorder %s787_s14, 2 }
  0x11   : > { %s1085_s21 = scalar_select %p860_p8, 1, 0 }
  0x12   : > { %s1086_s22 = scalar_select %p864_p9, 1, 0 }
  0x13   : > { %s869_s23 = scalar_select %p38_p7, %s775_s11, %s40_s18  }
  0x14   : > { %p871_p11 = por %p113_p10, %p53_p3  ;;  %s878_s25 = sand.u32 1, %s775_s11  }
  0x15   : > { %s541_s26 = sshll.u32 %s878_s25, 5  ;;  %s564_s27 = sshll.u32 %s783_s13, 9 }
  0x16   : > { %s1087_s24 = scalar_select %p871_p11, 1, 0 }
  0x17   : > { %s885_s30 = scalar_lea.hbm %s1079_s0, %s564_s27  ;;  %s137_s3 = scalar_lea.vmem [#allocation2], %s541_s26 }
  0x18   : > { %s144_s4 = sshll.u32 %s137_s3, 4  ;;  %p891_p0 = pnand %p584_p13, %p854_p4  ;;  %s887_s4 = int_to_ptr.vmem [resolvable:$true] %s144_s4 }
  0x19   : > { %s134_s6 = scalar_lea.sflag [#allocation3], %s878_s25  ;;  %s641_s7 = scalar_lea.hbm %s885_s30, 512 }
  0x1a   : > { %p642_p2 = scmp.ne.s32.totalorder %s885_s30, %s641_s7  ;;  %p643_p3 = pneg %p891_p0 }
  0x1b   : > { %s646_s16 = scalar_lea.hbm %s1079_s0, 1024  ;;  %p647_p4 = scmp.lt.u32.totalorder %s885_s30, %s1079_s0 }
  0x1c   : > { %p644_p5 = pnand %p643_p3, %p642_p2  ;;  %p648_p7 = scmp.lt.u32.totalorder %s646_s16, %s641_s7 }
  0x1d   : > { %p650_p13 = scmp.lt.u32.totalorder %s641_s7, %s885_s30 }
  0x1e   : > { %p645_p6 = pneg %p644_p5  ;;  %p649_p10 = por %p648_p7, %p647_p4 }
  0x20   : > { %p651_p12 = por %p650_p13, %p649_p10 }
  0x22   : > { %p652_p1 = pnand %p651_p12, %p645_p6 }
  0x24   : > { %655 = shalt.err (!%p652_p1)
}
  0x25   : > { %s656_s20 = scalar_lea.vmem %s887_s4, 512  ;;  %s789_s26 = smov [#allocation2]  }
  0x26   : > { %p657_p2 = scmp.ne.s32.totalorder %s887_s4, %s656_s20  ;;  %s661_s27 = sshll.u32 %s789_s26, 4  ;;  %s662_s27 = int_to_ptr.vmem [resolvable:$false] %s661_s27 }
  0x27   : > { %s663_s28 = scalar_lea.vmem %s662_s27, 1024  ;;  %p664_p9 = scmp.lt.s32.totalorder %s887_s4, %s662_s27 }
  0x28   : > { %p659_p5 = pnand %p657_p2, %p643_p3  ;;  %p665_p4 = scmp.lt.s32.totalorder %s663_s28, %s656_s20 }
  0x2a   : > { %p660_p11 = pneg %p659_p5  ;;  %p666_p7 = por %p665_p4, %p664_p9 }
  0x2c   : > { %p667_p10 = pnand %p666_p7, %p660_p11 }
  0x2e   : > { %670 = shalt.err (!%p667_p10)
}
  0x2f   : > { %s790_s29 = smov 256   ;;  %s791_s3 = smov 16  }
  0x30   : > { %576 = dma.hbm_to_vmem [thread:$0]  (!%p891_p0), %s885_s30, 512, %s887_s4, %s134_s6, %s790_s29, %s790_s29, %s791_s3  }
  0x31   : > { %p173_p12 = scmp.lt.s32.totalorder %s787_s14, 3  ;;  %s544_s7 = sshll.u32 %s878_s25, 3 }
  0x32   : > { %s565_s8 = sshll.u32 %s783_s13, 7  ;;  %p1089_p9 = scmp.ge.s32.totalorder %s787_s14, 1 }
  0x33   : > { %s936_s19 = scalar_lea.hbm %s1080_s1, %s565_s8  ;;  %s158_s20 = scalar_lea.vmem [#allocation5], %s544_s7 }
  0x34   : > { %p929_p11 = pnand %p1089_p9, %p173_p12  ;;  %s168_s26 = sshll.u32 %s158_s20, 4  ;;  %s169_s26 = int_to_ptr.vmem [resolvable:$true] %s168_s26 }
  0x35   : > { %s155_s30 = scalar_lea.sflag [#allocation6], %s878_s25  ;;  %s671_s4 = scalar_lea.hbm %s936_s19, 128 }
  0x36   : > { %s1090_s15 = scalar_select %p929_p11, 1, 0 }
  0x37   : > { %p672_p1 = scmp.ne.s32.totalorder %s936_s19, %s671_s4  ;;  %s676_s28 = scalar_lea.hbm %s1080_s1, 256 }
  0x38   : > { %p677_p2 = scmp.lt.u32.totalorder %s936_s19, %s1080_s1  ;;  %p678_p5 = scmp.lt.u32.totalorder %s676_s28, %s671_s4 }
  0x39   : > { %p674_p6 = pnand %p672_p1, %p643_p3  ;;  %p680_p7 = scmp.lt.u32.totalorder %s671_s4, %s936_s19 }
  0x3a   : > { %p679_p4 = por %p678_p5, %p677_p2 }
  0x3b   : > { %p675_p13 = pneg %p674_p6 }
  0x3c   : > { %p681_p10 = por %p680_p7, %p679_p4 }
  0x3e   : > { %p682_p12 = pnand %p681_p10, %p675_p13 }
  0x40   : > { %685 = shalt.err (!%p682_p12)
}
  0x41   : > { %s686_s25 = scalar_lea.vmem %s169_s26, 128  ;;  %s792_s7 = smov [#allocation5]  }
  0x42   : > { %p687_p9 = scmp.ne.s32.totalorder %s169_s26, %s686_s25  ;;  %s691_s8 = sshll.u32 %s792_s7, 4  ;;  %s692_s8 = int_to_ptr.vmem [resolvable:$false] %s691_s8 }
  0x43   : > { %s693_s16 = scalar_lea.vmem %s692_s8, 256  ;;  %p694_p8 = scmp.lt.s32.totalorder %s169_s26, %s692_s8 }
  0x44   : > { %p689_p1 = pnand %p687_p9, %p643_p3  ;;  %p695_p11 = scmp.lt.s32.totalorder %s693_s16, %s686_s25 }
  0x46   : > { %p690_p6 = pneg %p689_p1  ;;  %p696_p2 = por %p695_p11, %p694_p8 }
  0x48   : > { %p697_p5 = pnand %p696_p2, %p690_p6 }
  0x4a   : > { %700 = shalt.err (!%p697_p5)
}
  0x4b   : > { %579 = dma.hbm_to_vmem [thread:$0]  (!%p891_p0), %s936_s19, 128, %s169_s26, %s155_s30  }
  0x4c   : > { %p1091_p13 = scmp.ne.s32.totalorder %s1090_s15, 0 }
  0x4d   : > { %s961_s18 = sand.u32 (!%p1091_p13), 1, %s771_s10   ;;  %p1092_p8 = scmp.ne.s32.totalorder (!%p1091_p13), %s1085_s21, 0 }
  0x4e   : > { %177 = sbr.rel (%p1091_p13) target bundleno = 354 (0x162), region = 28  ;;  %s548_s20 = sshll.u32 (!%p1091_p13), %s961_s18, 5 }
  0x4f   : > { %s180_s4 = scalar_lea.sflag (!%p1091_p13), [#allocation3], %s961_s18  ;;  %s965_s6 = scalar_lea.vmem (!%p1091_p13), [#allocation2], %s548_s20 }
  0x55   : > { %754 = dma.done.wait (%p1092_p8), %s180_s4, 512  }
  0x56   : > { %756 = vsyncadd (%p1092_p8), %s180_s4, 4294966784  ;;  %s549_s5 = sshll.u32 %s961_s18, 3  ;;  %s189_s15 = scalar_lea.sflag [#allocation6], %s961_s18 }
  0x57   : > { %s192_s19 = scalar_lea.vmem [#allocation5], %s549_s5 }
  0x58   : > { %758 = dma.done.wait (%p1092_p8), %s189_s15, 128  }
  0x59   : > { %760 = vsyncadd (%p1092_p8), %s189_s15, 4294967168  ;;  %v226_v0 = vlaneseq  ;;  %v218_v2 = vld [vmem:[%s192_s19] sm:$0xff]  ;;  %s793_s26 = smov 127   ;;  %s794_s30 = smov 1  }
  0x5a   : > { %231 = vrot.lane.b32.xlu1 %v218_v2, %s793_s26  ;;  %222 = vrot.lane.b32.xlu0 %v218_v2, %s794_s30  ;;  %v220_v5 = vcombine.high %v218_v2, %v218_v2  ;;  %v554_v6 = vld [vmem:[%s965_s6 + $0x4] ss:$8 sm:$0x3]  ;;  %v551_v11 = vld [vmem:[%s965_s6 + $0x1] ss:$8 sm:$0x3] }
  0x5b   : > { %v241_v1 = vshrl.u32 %v226_v0, 7  ;;  %v557_v14 = vld [vmem:[%s965_s6 + $0x7] ss:$8 sm:$0x3]  ;;  %v992_v18 = vand.u32 127, %v226_v0  ;;  %s795_s21 = smov 16  }
  0x5c   : > { %v552_v19 = vld [vmem:[%s965_s6 + $0x2] ss:$8 sm:$0x3]  ;;  %v555_v20 = vld [vmem:[%s965_s6 + $0x5] ss:$8 sm:$0x3] }
  0x5d   : > { %v979_v3 = vsub.s32 0, %v241_v1  ;;  %v981_v4 = vsub.s32 1, %v241_v1  ;;  %v238_v24 = vld [vmem:[%s965_s6] ss:$8 sm:$0x3]  ;;  %vm235_vm0 = vcmp.lt.s32.totalorder %v992_v18, 127 }
  0x5e   : > { %233 = vrot.lane.b32.xlu1 %v220_v5, %s793_s26  ;;  %224 = vrot.lane.b32.xlu0 %v220_v5, %s794_s30  ;;  %v553_v25 = vld [vmem:[%s965_s6 + $0x3] ss:$8 sm:$0x3]  ;;  %vm228_vm1 = vcmp.lt.s32.totalorder %v992_v18, 1  ;;  %s796_s27 = smov 112   ;;  %vm394_vm2 = vcmp.lt.s32.totalorder %v992_v18, 16 }
  0x5f   : > { %v309_v7 = vrot.slane %v554_v6, %v979_v3  ;;  %v313_v8 = vrot.slane %v554_v6, %v981_v4  ;;  %v258_v12 = vrot.slane %v551_v11, %v979_v3  ;;  %v262_v13 = vrot.slane %v551_v11, %v981_v4  ;;  %v556_v27 = vld [vmem:[%s965_s6 + $0x6] ss:$8 sm:$0x3]  ;;  %v558_v32 = vld [vmem:[%s965_s6 + $0x10] ss:$8 sm:$0x3] }
  0x60   : > { %v360_v15 = vrot.slane %v557_v14, %v979_v3  ;;  %v364_v16 = vrot.slane %v557_v14, %v981_v4  ;;  %v277_v28 = vrot.slane %v552_v19, %v979_v3  ;;  %v281_v29 = vrot.slane %v552_v19, %v981_v4  ;;  %s566_s28 = sshll.u32 %s779_s12, 7  ;;  %s217_s29 = scalar_lea.vmem [#allocation7], %s549_s5 }
  0x61   : > { %v314_v9 = vcombine.low %v309_v7, %v313_v8  ;;  %v263_v17 = vcombine.low %v258_v12, %v262_v13  ;;  %v328_v30 = vrot.slane %v555_v20, %v979_v3  ;;  %v332_v31 = vrot.slane %v555_v20, %v981_v4  ;;  %s430_s3 = sshll.u32 %s217_s29, 4  ;;  %s1030_s8 = scalar_lea.hbm %s1081_s2, %s566_s28  ;;  %s1032_s3 = int_to_ptr.vmem [resolvable:$true] %s430_s3 }
  0x62   : > { %v365_v21 = vcombine.low %v360_v15, %v364_v16  ;;  %v243_v33 = vrot.slane %v238_v24, %v979_v3  ;;  %v247_v34 = vrot.slane %v238_v24, %v981_v4  ;;  %v294_v35 = vrot.slane %v553_v25, %v979_v3  ;;  %s414_s16 = scalar_lea.sflag [#allocation4], %s961_s18  ;;  %s701_s20 = scalar_lea.vmem %s1032_s3, 128 }
  0x63   : > { %v316_v10 = vmul.f32 %v314_v9, %v218_v2  ;;  %v265_v26 = vmul.f32 %v263_v17, %v218_v2  ;;  %v298_v38 = vrot.slane %v553_v25, %v981_v4  ;;  %v345_v39 = vrot.slane %v556_v27, %v979_v3  ;;  %p702_p0 = scmp.ne.s32.totalorder %s1032_s3, %s701_s20  ;;  %p1093_p3 = scmp.ne.s32.totalorder %s1086_s22, 0 }
  0x64   : > { %v367_v36 = vmul.f32 %v365_v21, %v218_v2  ;;  %v349_v40 = vrot.slane %v556_v27, %v981_v4  ;;  %v379_v47 = vrot.slane %v558_v32, %v979_v3  ;;  %v383_v51 = vrot.slane %v558_v32, %v981_v4  ;;  %s797_s12 = smov [#allocation7]  }
  0x65   : > { %v267_v42 = vcombine.high %v265_v26, %v265_v26  ;;  %v318_v50 = vcombine.high %v316_v10, %v316_v10  ;;  %vm403_vm3 = vcmp.lt.s32.totalorder %v992_v18, 112  ;;  %p703_p11 = pnand %p702_p0, %p1093_p3  ;;  %s705_s4 = sshll.u32 %s797_s12, 4  ;;  %s706_s4 = int_to_ptr.vmem [resolvable:$false] %s705_s4 }
  0x66   : > { %v369_v54 = vcombine.high %v367_v36, %v367_v36  ;;  %s707_s6 = scalar_lea.vmem %s706_s4, 256  ;;  %p708_p7 = scmp.lt.s32.totalorder %s1032_s3, %s706_s4 }
  0x67   : > { %p704_p4 = pneg %p703_p11  ;;  %p709_p10 = scmp.lt.s32.totalorder %s707_s6, %s701_s20 }
  0x69   : > { %p710_p12 = por %p709_p10, %p708_p7 }
  0x6b   : > { %p711_p9 = pnand %p710_p12, %p704_p4 }
  0xcc   : > { %v232_v22 = vpop.permute.xlu1 %231  ;;  %v223_v23 = vpop.permute.xlu0 %222 }
  0xd0   : > { %v234_v37 = vpop.permute.xlu1 %233  ;;  %v225_v41 = vpop.permute.xlu0 %224 }
  0xd1   : > { %v236_v43 = vsel %vm235_vm0, %v232_v22, %v234_v37  ;;  %v237_v44 = vsel %vm235_vm0, %v234_v37, %v232_v22  ;;  %v229_v45 = vsel %vm228_vm1, %v223_v23, %v225_v41  ;;  %v230_v46 = vsel %vm228_vm1, %v225_v41, %v223_v23 }
  0xd2   : > { %v335_v48 = vmul.f32 %v328_v30, %v236_v43  ;;  %v336_v49 = vmul.f32 %v332_v31, %v237_v44  ;;  %v250_v52 = vmul.f32 %v243_v33, %v230_v46  ;;  %v251_v53 = vmul.f32 %v247_v34, %v229_v45 }
  0xd3   : > { %v301_v55 = vmul.f32 %v294_v35, %v230_v46  ;;  %v302_v56 = vmul.f32 %v298_v38, %v229_v45  ;;  %v352_v57 = vmul.f32 %v345_v39, %v230_v46  ;;  %v353_v58 = vmul.f32 %v349_v40, %v229_v45 }
  0xd4   : > { %v284_v59 = vmul.f32 %v277_v28, %v236_v43  ;;  %v285_v60 = vmul.f32 %v281_v29, %v237_v44  ;;  %v269_v61 = vadd.f32 %v265_v26, %v250_v52  ;;  %v270_v62 = vadd.f32 %v267_v42, %v251_v53 }
  0xd5   : > { %v320_v63 = vadd.f32 %v316_v10, %v301_v55  ;;  %v321_v0 = vadd.f32 %v318_v50, %v302_v56  ;;  %v371_v3 = vadd.f32 %v367_v36, %v352_v57  ;;  %v372_v5 = vadd.f32 %v369_v54, %v353_v58 }
  0xd6   : > { %v286_v1 = vadd.f32 %v284_v59, %v269_v61  ;;  %v287_v2 = vadd.f32 %v285_v60, %v270_v62  ;;  %v386_v4 = vmul.f32 %v379_v47, %v236_v43  ;;  %v387_v8 = vmul.f32 %v383_v51, %v237_v44 }
  0xd7   : > { %v337_v6 = vadd.f32 %v335_v48, %v320_v63  ;;  %v338_v7 = vadd.f32 %v336_v49, %v321_v0 }
  0xd8   : > { %390 = vrot.lane.b32.xlu0 %v286_v1, %s795_s21  ;;  %392 = vrot.lane.b32.xlu1 %v287_v2, %s795_s21  ;;  %v388_v9 = vadd.f32 %v386_v4, %v371_v3  ;;  %v389_v11 = vadd.f32 %v387_v8, %v372_v5 }
  0xdc   : > { %399 = vrot.lane.b32.xlu0 %v388_v9, %s796_s27  ;;  %401 = vrot.lane.b32.xlu1 %v389_v11, %s796_s27 }
 0x14a   : > { %v391_v10 = vpop.permute.xlu0 %390  ;;  %v393_v12 = vpop.permute.xlu1 %392 }
 0x14b   : > { %v395_v13 = vsel %vm394_vm2, %v391_v10, %v393_v12  ;;  %v396_v14 = vsel %vm394_vm2, %v393_v12, %v391_v10 }
 0x14c   : > { %v397_v15 = vadd.f32 %v396_v14, %v337_v6  ;;  %v398_v16 = vadd.f32 %v395_v13, %v338_v7 }
 0x14e   : > { %v400_v17 = vpop.permute.xlu0 %399  ;;  %v402_v19 = vpop.permute.xlu1 %401 }
 0x14f   : > { %v404_v20 = vsel %vm403_vm3, %v400_v17, %v402_v19  ;;  %v405_v21 = vsel %vm403_vm3, %v402_v19, %v400_v17 }
 0x150   : > { %v406_v22 = vadd.f32 %v404_v20, %v397_v15  ;;  %v407_v23 = vadd.f32 %v405_v21, %v398_v16 }
 0x152   : > { %v410_v24 = vcombine.low %v406_v22, %v407_v23 }
 0x154   : > { %412 = vst [vmem:[%s217_s29] sm:$0xff] %v410_v24 }
 0x155   : > { %714 = shalt.err (!%p711_p9)
}
 0x156   : > { %s715_s18 = scalar_lea.hbm %s1030_s8, 128  ;;  %s719_s19 = scalar_lea.hbm %s1081_s2, 256 }
 0x157   : > { %p716_p1 = scmp.ne.s32.totalorder %s1030_s8, %s715_s18  ;;  %p720_p5 = scmp.lt.u32.totalorder %s1030_s8, %s1081_s2 }
 0x158   : > { %p721_p13 = scmp.lt.u32.totalorder %s719_s19, %s715_s18  ;;  %p723_p0 = scmp.lt.u32.totalorder %s715_s18, %s1030_s8 }
 0x159   : > { %p717_p6 = pnand %p716_p1, %p1093_p3 }
 0x15a   : > { %p722_p8 = por %p721_p13, %p720_p5 }
 0x15b   : > { %p718_p2 = pneg %p717_p6 }
 0x15c   : > { %p724_p11 = por %p723_p0, %p722_p8 }
 0x15e   : > { %p725_p4 = pnand %p724_p11, %p718_p2 }
 0x160   : > { %728 = shalt.err (!%p725_p4)
}
 0x161   : > { %571 = dma.vmem_to_hbm [thread:$0]  (%p1093_p3), %s1032_s3, 128, %s1030_s8, %s414_s16  }
 0x162 PF: > { %s442_s21 = sand.u32 1, %s767_s9   ;;  %p1094_p7 = scmp.ne.s32.totalorder %s1087_s24, 0 }
 0x163   : > { %p1095_p10 = scmp.ge.s32.totalorder %s787_s14, 2  ;;  %s443_s27 = scalar_lea.sflag [#allocation4], %s442_s21 }
 0x165   : > { %p581_p12 = pnand %p1095_p10, %p1094_p7 }
 0x167   : > { %762 = dma.done.wait (!%p581_p12), %s443_s27, 128  }
 0x168   : > { %764 = vsyncadd (!%p581_p12), %s443_s27, 4294967168  ;;  %s21_s14 = sadd.s32 1, %s787_s14   ;;  %s1096_s9 = smov %s771_s10 }
 0x169   : > { %p18_p9 = scmp.ge.s32.totalorder %s21_s14, 4   ;;  %s1097_s10 = smov %s775_s11 }
 0x16a   : > { %s1098_s11 = smov %s869_s23  ;;  %s1099_s12 = smov %s783_s13 }
 0x16b   : > { %s1100_s13 = smov %s1102_s17  ;;  %20 = sbr.rel (!%p18_p9) target bundleno = 8 (0x8), region = 94 }
 0x172   :  { %448 = vsyncpa [#allocation3], 1 }
 0x173   :  { %450 = vsyncpa [#allocation3 + $0x1], 1 }
 0x174   :  { %451 = vsyncpa [#allocation6], 1 }
 0x175   :  { %453 = vsyncpa [#allocation6 + $0x1], 1 }
 0x176   :  { %454 = vsyncpa [#allocation4], 1 }
 0x177   :  { %456 = vsyncpa [#allocation4 + $0x1], 1 }

</bundles_post_ra>
